<compile_context>
chip_gen: v7x
topology: tpu7x:2x2x1
jax: 0.10.0
libtpu: 0.0.40
codegen_flags: <defaults>
</compile_context>

<pallas_src>
import functools

import jax
import jax.numpy as jnp
from jax.experimental import pallas as pl
from jax.experimental.pallas import tpu as pltpu


def _round_up(a, b):
    return ((a + b - 1) // b) * b


def _largest_aligned_divisor(n, limit, align):
    """Largest d <= limit with d % align == 0 and n % d == 0; 0 if none."""
    best = 0
    d = align
    limit = min(limit, n)
    while d <= limit:
        if n % d == 0:
            best = d
        d += align
    return best


def _mlp_kernel(x_ref, wg_ref, wu_ref, wd_ref, o_ref, acc_ref):
    """One (M-tile, I-tile) step of the SwiGLU MLP.

    x_ref   : (tm, H)      activation tile (resident across the I axis)
    wg_ref  : (H, ti)      gate_proj weight slab for this I tile
    wu_ref  : (H, ti)      up_proj weight slab for this I tile
    wd_ref  : (ti, H)      down_proj weight slab for this I tile
    o_ref   : (tm, H)      output tile (written once, at the last I step)
    acc_ref : (tm, H) f32  accumulator scratch
    """
    n = pl.program_id(1)

    # MXU matmuls in the weight dtype (bf16 by default), f32 accumulation.
    gate = jnp.dot(x_ref[...], wg_ref[...], preferred_element_type=jnp.float32)
    up = jnp.dot(x_ref[...], wu_ref[...], preferred_element_type=jnp.float32)

    # silu(gate) * up in f32 (sigmoid -> EUP, muls -> VPU).
    hidden = (gate * jax.nn.sigmoid(gate)) * up

    # Partial down_proj for this I tile (f32 accumulation on the MXU).
    part = jnp.dot(hidden.astype(wd_ref.dtype), wd_ref[...],
                   preferred_element_type=jnp.float32)

    @pl.when(n == 0)
    def _():
        acc_ref[...] = part          # no zero-fill; write first partial directly

    @pl.when(n != 0)
    def _():
        acc_ref[...] += part

    @pl.when(n == pl.num_programs(1) - 1)
    def _():
        o_ref[...] = acc_ref[...].astype(o_ref.dtype)


def pack_mlp_weights(w_gate, w_up, w_down, *, dtype=jnp.bfloat16, i_align=128):
    """One-time repack from PyTorch nn.Linear layout to kernel layout.

    w_gate, w_up : (I, H)  ->  (H, Ip) transposed slabs (cast to `dtype`)
    w_down       : (H, I)  ->  (Ip, H)
    I is zero-padded to a multiple of `i_align`; the padded columns/rows
    contribute exactly zero to the output (silu(0)*0 = 0, 0 * w = 0).
    Do this at parameter-load time, NOT per forward call.
    """
    w_gate = jnp.asarray(w_gate)
    w_up = jnp.asarray(w_up)
    w_down = jnp.asarray(w_down)
    I, H = w_gate.shape
    Ip = _round_up(I, i_align)

    wg_t = w_gate.T.astype(dtype)        # (H, I)
    wu_t = w_up.T.astype(dtype)          # (H, I)
    wd_t = w_down.T.astype(dtype)        # (I, H)
    if Ip != I:
        wg_t = jnp.pad(wg_t, ((0, 0), (0, Ip - I)))
        wu_t = jnp.pad(wu_t, ((0, 0), (0, Ip - I)))
        wd_t = jnp.pad(wd_t, ((0, Ip - I), (0, 0)))
    return wg_t, wu_t, wd_t


@functools.partial(jax.jit, static_argnames=("tm", "ti"))
def mlp_pallas(x, wg_t, wu_t, wd_t, *, tm=512, ti=512):
    """SwiGLU MLP forward: down_proj(silu(gate_proj(x)) * up_proj(x)).

    x            : (..., H), any float dtype (output keeps this dtype)
    wg_t, wu_t   : (H, I)  packed gate/up weights (see pack_mlp_weights)
    wd_t         : (I, H)  packed down weights
    """
    orig_shape = x.shape
    H = orig_shape[-1]
    I = wd_t.shape[0]
    assert wg_t.shape == (H, I) and wu_t.shape == (H, I) and wd_t.shape == (I, H)

    cdtype = wg_t.dtype                       # compute dtype (bf16 by default)
    x2d = x.reshape(-1, H).astype(cdtype)
    M = x2d.shape[0]

    # --- generation-aware VMEM budget --------------------------------------
    try:
        vmem_cap = int(pltpu.get_tpu_info().vmem_capacity_bytes)
    except Exception:
        vmem_cap = 64 << 20                   # conservative (v7x per-TC size)
    vmem_budget = int(vmem_cap * 0.8)

    # --- tile sizing --------------------------------------------------------
    # M tile: bounded (pipelining + megacore sharding), multiple of 8.
    tm = int(min(tm, _round_up(M, 8)))
    tm = max(8, _round_up(tm, 8))

    # I tile: largest 128-aligned divisor of I <= requested (always exists if
    # the weights were packed with i_align=128); full-dim fallback otherwise.
    ti = _largest_aligned_divisor(I, max(128, int(ti)), 128)
    if ti == 0:
        ti = I

    in_bytes = jnp.dtype(cdtype).itemsize
    out_bytes = jnp.dtype(x.dtype).itemsize

    def vmem_estimate(tm_, ti_):
        per_buf = (tm_ * H * in_bytes            # x tile
                   + 2 * H * ti_ * in_bytes      # gate + up slabs
                   + ti_ * H * in_bytes          # down slab
                   + tm_ * H * out_bytes)        # output tile
        return 2 * per_buf + tm_ * H * 4 + (2 << 20)   # double-buffer + acc + slack

    # Shrink tiles until the double-buffered working set fits the budget.
    while vmem_estimate(tm, ti) > vmem_budget and tm > 128:
        tm = max(128, _round_up(tm // 2, 8))
    while vmem_estimate(tm, ti) > vmem_budget:
        smaller = _largest_aligned_divisor(I, ti - 128, 128)
        if smaller == 0:
            break
        ti = smaller

    Mp = _round_up(M, tm)
    if Mp != M:
        x2d = jnp.pad(x2d, ((0, Mp - M), (0, 0)))   # zero rows -> zero output rows

    grid = (Mp // tm, I // ti)

    out = pl.pallas_call(
        _mlp_kernel,
        out_shape=jax.ShapeDtypeStruct((Mp, H), x.dtype),
        grid_spec=pltpu.PrefetchScalarGridSpec(
            num_scalar_prefetch=0,
            grid=grid,
            in_specs=[
                pl.BlockSpec((tm, H), lambda i, n: (i, 0)),   # x (resident over n)
                pl.BlockSpec((H, ti), lambda i, n: (0, n)),   # gate slab
                pl.BlockSpec((H, ti), lambda i, n: (0, n)),   # up slab
                pl.BlockSpec((ti, H), lambda i, n: (n, 0)),   # down slab
            ],
            out_specs=pl.BlockSpec((tm, H), lambda i, n: (i, 0)),
            scratch_shapes=[pltpu.VMEM((tm, H), jnp.float32)],
        ),
        compiler_params=pltpu.CompilerParams(
            dimension_semantics=("parallel", "arbitrary"),
            vmem_limit_bytes=int(vmem_budget),
        ),
    )(x2d, wg_t, wu_t, wd_t)

    if Mp != M:
        out = out[:M]
    return out.reshape(orig_shape)


def mlp_reference(x, w_gate, w_up, w_down):
    hi = jax.lax.Precision.HIGHEST
    gate = jnp.dot(x, w_gate.T, precision=hi)
    up = jnp.dot(x, w_up.T, precision=hi)
    hidden = (gate * jax.nn.sigmoid(gate)) * up
    return jnp.dot(hidden, w_down.T, precision=hi)


def _make_params(key, hidden_size, intermediate_size, dtype=jnp.float32):
    k_g, k_u, k_d = jax.random.split(key, 3)
    bound_h = 1.0 / (hidden_size ** 0.5)
    bound_i = 1.0 / (intermediate_size ** 0.5)
    w_gate = jax.random.uniform(k_g, (intermediate_size, hidden_size),
                                dtype, -bound_h, bound_h)
    w_up = jax.random.uniform(k_u, (intermediate_size, hidden_size),
                              dtype, -bound_h, bound_h)
    w_down = jax.random.uniform(k_d, (hidden_size, intermediate_size),
                                dtype, -bound_i, bound_i)
    return w_gate, w_up, w_down


if __name__ == "__main__":
    key = jax.random.PRNGKey(0)
    k_p1, k_x1, k_p2, k_x2 = jax.random.split(key, 4)

    # --- small shape consistent with the module -----------------------------
    batch, seq = 2, 8
    hidden_size, intermediate_size = 32, 64
    w_gate, w_up, w_down = _make_params(k_p1, hidden_size, intermediate_size)
    x = jax.random.normal(k_x1, (batch, seq, hidden_size), jnp.float32)
    ref = mlp_reference(x, w_gate, w_up, w_down)

    # Exact-path check: f32 weight packing (kernel math == reference math).
    wg32, wu32, wd32 = pack_mlp_weights(w_gate, w_up, w_down, dtype=jnp.float32)
    out32 = jax.block_until_ready(mlp_pallas(x, wg32, wu32, wd32))
    assert out32.shape == (batch, seq, hidden_size)
    assert jnp.allclose(out32, ref, atol=1e-3, rtol=1e-3)

    # Fast path: bf16 weight packing (default), f32 accumulation.
    wg16, wu16, wd16 = pack_mlp_weights(w_gate, w_up, w_down)
    out16 = jax.block_until_ready(mlp_pallas(x, wg16, wu16, wd16))
    assert out16.shape == (batch, seq, hidden_size)
    assert jnp.allclose(out16, ref, atol=3e-2, rtol=3e-2)

    # --- modest shape exercising real tiling (M and I grid axes, M padding) --
    batch2, seq2 = 2, 250            # M = 500 -> padded to a multiple of tm
    hidden2, inter2 = 256, 512
    w_gate2, w_up2, w_down2 = _make_params(k_p2, hidden2, inter2)
    wg2, wu2, wd2 = pack_mlp_weights(w_gate2, w_up2, w_down2)
    x2 = jax.random.normal(k_x2, (batch2, seq2, hidden2), jnp.float32)
    out2 = jax.block_until_ready(mlp_pallas(x2, wg2, wu2, wd2, tm=128, ti=256))
    ref2 = mlp_reference(x2, w_gate2, w_up2, w_down2)
    assert out2.shape == (batch2, seq2, hidden2)
    assert jnp.allclose(out2, ref2, atol=3e-2, rtol=3e-2)

    print("KERNEL_OK")
</pallas_src>

<mosaic_0001>
module attributes {stable_mosaic.version = 11 : i64} {
  func.func @_mlp_kernel(%arg0: i32, %arg1: i32, %arg2: memref<16x32xf32, #tpu.memory_space<vmem>>, %arg3: memref<32x128xf32, #tpu.memory_space<vmem>>, %arg4: memref<32x128xf32, #tpu.memory_space<vmem>>, %arg5: memref<128x32xf32, #tpu.memory_space<vmem>>, %arg6: memref<16x32xf32, #tpu.memory_space<vmem>>, %arg7: memref<16x32xf32, #tpu.memory_space<vmem>>) attributes {dimension_semantics = [#tpu.dimension_semantics<parallel>, #tpu.dimension_semantics<arbitrary>], iteration_bounds = array<i64: 1, 1>, scalar_prefetch = 0 : i64, scratch_operands = 1 : i64, tpu.core_type = #tpu.core_type<tc>, window_params = [{transform_indices = @transform_0, window_bounds = array<i64: 16, 32>}, {transform_indices = @transform_1, window_bounds = array<i64: 32, 128>}, {transform_indices = @transform_2, window_bounds = array<i64: 32, 128>}, {transform_indices = @transform_3, window_bounds = array<i64: 128, 32>}, {transform_indices = @transform_4, window_bounds = array<i64: 16, 32>}]} {
    %c0 = arith.constant 0 : index
    %c0_0 = arith.constant 0 : index
    %0 = vector.load %arg2[%c0, %c0_0] : memref<16x32xf32, #tpu.memory_space<vmem>>, vector<16x32xf32>
    %c0_1 = arith.constant 0 : index
    %c0_2 = arith.constant 0 : index
    %1 = vector.load %arg3[%c0_1, %c0_2] : memref<32x128xf32, #tpu.memory_space<vmem>>, vector<32x128xf32>
    %cst = arith.constant dense<0.000000e+00> : vector<16x128xf32>
    %2 = tpu.matmul %0, %1, %cst {dimension_numbers = #tpu.dot_dimension_numbers<[1], [0], [0], [1], [0, 0, 1, 1], [], []>} : vector<16x32xf32>, vector<32x128xf32>, vector<16x128xf32> -> vector<16x128xf32>
    %c0_3 = arith.constant 0 : index
    %c0_4 = arith.constant 0 : index
    %3 = vector.load %arg2[%c0_3, %c0_4] : memref<16x32xf32, #tpu.memory_space<vmem>>, vector<16x32xf32>
    %c0_5 = arith.constant 0 : index
    %c0_6 = arith.constant 0 : index
    %4 = vector.load %arg4[%c0_5, %c0_6] : memref<32x128xf32, #tpu.memory_space<vmem>>, vector<32x128xf32>
    %cst_7 = arith.constant dense<0.000000e+00> : vector<16x128xf32>
    %5 = tpu.matmul %3, %4, %cst_7 {dimension_numbers = #tpu.dot_dimension_numbers<[1], [0], [0], [1], [0, 0, 1, 1], [], []>} : vector<16x32xf32>, vector<32x128xf32>, vector<16x128xf32> -> vector<16x128xf32>
    %6 = arith.negf %2 : vector<16x128xf32>
    %7 = math.exp %6 : vector<16x128xf32>
    %cst_8 = arith.constant 1.000000e+00 : f32
    %8 = vector.broadcast %cst_8 : f32 to vector<16x128xf32>
    %9 = arith.addf %8, %7 : vector<16x128xf32>
    %10 = arith.divf %8, %9 : vector<16x128xf32>
    %11 = arith.mulf %2, %10 : vector<16x128xf32>
    %12 = arith.mulf %11, %5 : vector<16x128xf32>
    %c0_9 = arith.constant 0 : index
    %c0_10 = arith.constant 0 : index
    %13 = vector.load %arg5[%c0_9, %c0_10] : memref<128x32xf32, #tpu.memory_space<vmem>>, vector<128x32xf32>
    %cst_11 = arith.constant dense<0.000000e+00> : vector<16x32xf32>
    %14 = tpu.matmul %12, %13, %cst_11 {dimension_numbers = #tpu.dot_dimension_numbers<[1], [0], [0], [1], [0, 0, 1, 1], [], []>} : vector<16x128xf32>, vector<128x32xf32>, vector<16x32xf32> -> vector<16x32xf32>
    %c0_i32 = arith.constant 0 : i32
    %15 = arith.cmpi eq, %arg1, %c0_i32 : i32
    %16 = arith.extui %15 : i1 to i32
    %c0_i32_12 = arith.constant 0 : i32
    %17 = arith.cmpi ne, %16, %c0_i32_12 : i32
    scf.if %17 {
      %c0_17 = arith.constant 0 : index
      %c0_18 = arith.constant 0 : index
      %24 = vector.load %arg7[%c0_17, %c0_18] : memref<16x32xf32, #tpu.memory_space<vmem>>, vector<16x32xf32>
      tpu.vector_store %arg7[%c0_17, %c0_18], %14 {strides = array<i32>} : memref<16x32xf32, #tpu.memory_space<vmem>>, vector<16x32xf32>,
    } else {
    }
    %c0_i32_13 = arith.constant 0 : i32
    %18 = arith.cmpi ne, %arg1, %c0_i32_13 : i32
    %19 = arith.extui %18 : i1 to i32
    %c0_i32_14 = arith.constant 0 : i32
    %20 = arith.cmpi ne, %19, %c0_i32_14 : i32
    scf.if %20 {
      %c0_17 = arith.constant 0 : index
      %c0_18 = arith.constant 0 : index
      %24 = vector.load %arg7[%c0_17, %c0_18] : memref<16x32xf32, #tpu.memory_space<vmem>>, vector<16x32xf32>
      %25 = arith.addf %24, %14 : vector<16x32xf32>
      %c0_19 = arith.constant 0 : index
      %c0_20 = arith.constant 0 : index
      %26 = vector.load %arg7[%c0_19, %c0_20] : memref<16x32xf32, #tpu.memory_space<vmem>>, vector<16x32xf32>
      tpu.vector_store %arg7[%c0_19, %c0_20], %25 {strides = array<i32>} : memref<16x32xf32, #tpu.memory_space<vmem>>, vector<16x32xf32>,
    } else {
    }
    %c0_i32_15 = arith.constant 0 : i32
    %21 = arith.cmpi eq, %arg1, %c0_i32_15 : i32
    %22 = arith.extui %21 : i1 to i32
    %c0_i32_16 = arith.constant 0 : i32
    %23 = arith.cmpi ne, %22, %c0_i32_16 : i32
    scf.if %23 {
      %c0_17 = arith.constant 0 : index
      %c0_18 = arith.constant 0 : index
      %24 = vector.load %arg7[%c0_17, %c0_18] : memref<16x32xf32, #tpu.memory_space<vmem>>, vector<16x32xf32>
      %c0_19 = arith.constant 0 : index
      %c0_20 = arith.constant 0 : index
      %25 = vector.load %arg6[%c0_19, %c0_20] : memref<16x32xf32, #tpu.memory_space<vmem>>, vector<16x32xf32>
      tpu.vector_store %arg6[%c0_19, %c0_20], %24 {strides = array<i32>} : memref<16x32xf32, #tpu.memory_space<vmem>>, vector<16x32xf32>,
    } else {
    }
    return
  }
  func.func @transform_0(%arg0: i32, %arg1: i32) -> (i32, i32) {
    %c0_i32 = arith.constant 0 : i32
    %c0_i32_0 = arith.constant 0 : i32
    return %arg0, %c0_i32 : i32, i32
  }
  func.func @transform_1(%arg0: i32, %arg1: i32) -> (i32, i32) {
    %c0_i32 = arith.constant 0 : i32
    %c0_i32_0 = arith.constant 0 : i32
    return %c0_i32, %arg1 : i32, i32
  }
  func.func @transform_2(%arg0: i32, %arg1: i32) -> (i32, i32) {
    %c0_i32 = arith.constant 0 : i32
    %c0_i32_0 = arith.constant 0 : i32
    return %c0_i32, %arg1 : i32, i32
  }
  func.func @transform_3(%arg0: i32, %arg1: i32) -> (i32, i32) {
    %c0_i32 = arith.constant 0 : i32
    %c0_i32_0 = arith.constant 0 : i32
    return %arg1, %c0_i32 : i32, i32
  }
  func.func @transform_4(%arg0: i32, %arg1: i32) -> (i32, i32) {
    %c0_i32 = arith.constant 0 : i32
    %c0_i32_0 = arith.constant 0 : i32
    return %arg0, %c0_i32 : i32, i32
  }
}

</mosaic_0001>

<bundles_post_ra>
// kernel: mlp_pallas.1
= control target key start
LH: loop header
LB: loop body
LE: loop exit
PB: predicated region body
PF: predicated region fallthrough
CT: control target
= control target key end

     0   :  { %vm24_vm0 = vcmask 261120   ;;  %s633_s0 = inlined_call_operand.vmem [shape: f32[16,32], index: 0, kind: input, shape index: {}]   ;;  %s634_s1 = inlined_call_operand.vmem [shape: f32[32,128], index: 1, kind: input, shape index: {}]   ;;  %s635_s2 = inlined_call_operand.vmem [shape: f32[32,128], index: 2, kind: input, shape index: {}]   ;;  %s636_s3 = inlined_call_operand.vmem [shape: f32[128,32], index: 3, kind: input, shape index: {}]   ;;  %s637_s4 = inlined_call_operand.hbm [shape: f32[16,32], index: 4, kind: output, shape index: {}]  }
   0x1   :  { %v20_v0 = vld [vmem:[%s634_s1] sm:$0xff]  ;;  %v21_v1 = vld [vmem:[%s634_s1 + $0x8] sm:$0xff]  ;;  %v22_v2 = vld [vmem:[%s634_s1 + $0x10] sm:$0xff] }
   0x2   :  { %v424_v3 = vpack.c.bf16 %v21_v1, %v20_v0  ;;  %v23_v4 = vld [vmem:[%s634_s1 + $0x18] sm:$0xff]  ;;  %v18_v5 = vld [vmem:[%s633_s0] sm:$0xff]  ;;  %v107_v8 = vld [vmem:[%s635_s2 + $0x8] sm:$0xff] }
   0x3   :  { %v428_v6 = vpack.c.bf16 %v23_v4, %v22_v2  ;;  %375 = vmatprep.mubr.msk.f32.mxu1 %vm24_vm0, %v18_v5  ;;  %v106_v7 = vld [vmem:[%s635_s2] sm:$0xff] }
   0x4   :  { %425 = vmatprep.subr.bf16.mxu1 %v424_v3 }
   0x5   :  { %9 = vsyncpa [#allocation4], 0  ;;  %427 = vmatpush3.bf16.msra.mxu1 %v424_v3  ;;  %v432_v9 = vpack.c.bf16 %v107_v8, %v106_v7  ;;  %v108_v10 = vld [vmem:[%s635_s2 + $0x10] sm:$0xff]  ;;  %v109_v11 = vld [vmem:[%s635_s2 + $0x18] sm:$0xff] }
   0x6   :  { %429 = vmatprep.subr.bf16.mxu1 %v428_v6  ;;  %v19_v12 = vld [vmem:[%s633_s0 + $0x8] sm:$0xff]  ;;  %v436_v13 = vpack.c.bf16 %v109_v11, %v108_v10  ;;  %v201_v14 = vld [vmem:[%s636_s3] sm:$0xff]  ;;  %v203_v17 = vld [vmem:[%s636_s3 + $0x10] sm:$0xff] }
   0x7   :  { %v202_v15 = vld [vmem:[%s636_s3 + $0x8] sm:$0xff]  ;;  %v204_v18 = vld [vmem:[%s636_s3 + $0x18] sm:$0xff]  ;;  %v205_v20 = vld [vmem:[%s636_s3 + $0x20] sm:$0xff] }
   0x8   :  { %v440_v16 = vpack.c.bf16 %v202_v15, %v201_v14  ;;  %v444_v19 = vpack.c.bf16 %v204_v18, %v203_v17  ;;  %v206_v21 = vld [vmem:[%s636_s3 + $0x28] sm:$0xff]  ;;  %v207_v23 = vld [vmem:[%s636_s3 + $0x30] sm:$0xff]  ;;  %v208_v24 = vld [vmem:[%s636_s3 + $0x38] sm:$0xff] }
   0x9   :  { %431 = vmatpush3.bf16.msra.mxu1 %v428_v6  ;;  %v448_v22 = vpack.c.bf16 %v206_v21, %v205_v20  ;;  %v452_v25 = vpack.c.bf16 %v208_v24, %v207_v23  ;;  %v209_v26 = vld [vmem:[%s636_s3 + $0x40] sm:$0xff]  ;;  %v210_v27 = vld [vmem:[%s636_s3 + $0x48] sm:$0xff]  ;;  %v211_v29 = vld [vmem:[%s636_s3 + $0x50] sm:$0xff] }
   0xa   :  { %433 = vmatprep.subr.bf16.mxu1 %v432_v9  ;;  %441 = vmatprep.subr.bf16.mxu0 %v440_v16  ;;  %v456_v28 = vpack.c.bf16 %v210_v27, %v209_v26  ;;  %v212_v30 = vld [vmem:[%s636_s3 + $0x58] sm:$0xff]  ;;  %v213_v32 = vld [vmem:[%s636_s3 + $0x60] sm:$0xff]  ;;  %v214_v33 = vld [vmem:[%s636_s3 + $0x68] sm:$0xff] }
   0xb   :  { %443 = vmatpush3.bf16.msra.mxu0 %v440_v16  ;;  %v460_v31 = vpack.c.bf16 %v212_v30, %v211_v29  ;;  %v464_v34 = vpack.c.bf16 %v214_v33, %v213_v32  ;;  %v215_v35 = vld [vmem:[%s636_s3 + $0x70] sm:$0xff]  ;;  %v216_v36 = vld [vmem:[%s636_s3 + $0x78] sm:$0xff]  ;;  %s507_s3 = smov [#allocation3]  }
   0xc   :  { %376 = vmatmul.mubr.msk.f32.vlgmr.msra.gmra.mrb[0].mxu1 %vm24_vm0, %v19_v12  ;;  %445 = vmatprep.subr.bf16.mxu0 %v444_v19  ;;  %v468_v37 = vpack.c.bf16 %v216_v36, %v215_v35  ;;  %s320_s10 = sshll.u32 %s507_s3, 4  ;;  %s321_s10 = int_to_ptr.vmem [resolvable:$true] %s320_s10 }
   0xd   :  { %435 = vmatpush3.bf16.msra.mxu1 %v432_v9  ;;  %386 = vmatprep.mubr.msk.f32.mxu1 %vm24_vm0, %v18_v5  ;;  %s483_s0 = scalar_lea.vmem %s321_s10, 256  ;;  %p488_p1 = scmp.lt.s32.totalorder %s321_s10, %s321_s10 }
   0xe   :  { %437 = vmatprep.subr.bf16.mxu1 %v436_v13  ;;  %p484_p0 = scmp.ne.s32.totalorder %s321_s10, %s483_s0  ;;  %p489_p2 = scmp.lt.s32.totalorder %s483_s0, %s483_s0 }
   0xf   :  { %447 = vmatpush3.bf16.msra.mxu0 %v444_v19 }
  0x10   :  { %449 = vmatprep.subr.bf16.mxu0 %v448_v22  ;;  %p490_p3 = por %p489_p2, %p488_p1 }
  0x11   :  { %439 = vmatpush3.bf16.msra.mxu1 %v436_v13 }
  0x12   :  { %p491_p4 = pnand %p490_p3, %p484_p0 }
  0x13   :  { %451 = vmatpush3.bf16.msra.mxu0 %v448_v22 }
  0x14   :  { %387 = vmatmul.mubr.msk.f32.vlgmr.msra.gmra.mrb[2].mxu1 %vm24_vm0, %v19_v12  ;;  %453 = vmatprep.subr.bf16.mxu0 %v452_v25 }
  0x17   :  { %455 = vmatpush3.bf16.msra.mxu0 %v452_v25 }
  0x18   :  { %457 = vmatprep.subr.bf16.mxu0 %v456_v28 }
  0x1b   :  { %459 = vmatpush3.bf16.msra.mxu0 %v456_v28 }
  0x1c   :  { %461 = vmatprep.subr.bf16.mxu0 %v460_v31 }
  0x1f   :  { %463 = vmatpush3.bf16.msra.mxu0 %v460_v31 }
  0x20   :  { %465 = vmatprep.subr.bf16.mxu0 %v464_v34 }
  0x23   :  { %467 = vmatpush3.bf16.msra.mxu0 %v464_v34 }
  0x24   :  { %469 = vmatprep.subr.bf16.mxu0 %v468_v37 }
  0x27   :  { %471 = vmatpush3.bf16.msra.mxu0 %v468_v37 }
  0xdf   :  { %v377_v38 = vpop.f32.mrb[0].mxu1 }
  0xe0   :  { %v336_v39 = vmul.f32 -1.442695, %v377_v38  ;;  %v97_v40 = vpop.f32.mrb[1].mxu1 }
  0xe1   :  { %v335_v41 = vmul.f32 -1.442695, %v97_v40 }
  0xe2   :  { %475 = vpow2.f32 %v336_v39 }
  0xe3   :  { %477 = vpow2.f32 %v335_v41 }
  0xe7   :  { %v388_v42 = vpop.f32.mrb[2].mxu1 }
  0xe8   :  { %v176_v43 = vpop.f32.mrb[3].mxu1 }
  0xec   :  { %v476_v44 = vpop.eup %475 }
  0xed   :  { %v478_v45 = vpop.eup %477  ;;  %v192_v46 = vadd.f32 1.0, %v476_v44 }
  0xee   :  { %v191_v47 = vadd.f32 1.0, %v478_v45 }
  0xef   :  { %479 = vrcp.f32 %v192_v46 }
  0xf0   :  { %481 = vrcp.f32 %v191_v47 }
  0xf9   :  { %v480_v48 = vpop.eup %479 }
  0xfa   :  { %v482_v49 = vpop.eup %481  ;;  %v198_v50 = vmul.f32 %v480_v48, %v377_v38 }
  0xfb   :  { %v197_v51 = vmul.f32 %v482_v49, %v97_v40 }
  0xfc   :  { %v200_v52 = vmul.f32 %v388_v42, %v198_v50 }
  0xfd   :  { %v199_v53 = vmul.f32 %v197_v51, %v176_v43 }
  0xff   :  { %421 = vmatprep.mubr.f32.mxu0 %v199_v53 }
 0x100   :  { %422 = vmatmul.mubr.f32.vlgmr.msra.gmra.mrb[0].mxu0 %v200_v52 }
 0x1d3   :  { %v423_v54 = vpop.f32.mrb[0].mxu0 }
 0x1d4   :  { %297 = vst.msk [vmem:[#allocation2 + $0x8] sm:$0xff] %vm24_vm0, %v423_v54  ;;  %v283_v55 = vpop.f32.mrb[1].mxu0 }
 0x1d5   :  { %296 = vst.msk [vmem:[#allocation2] sm:$0xff] %vm24_vm0, %v283_v55 }
 0x1db   :  { %v312_v56 = vld [vmem:[#allocation2 + $0x8] sm:$0xff] }
 0x1dc   :  { %v311_v57 = vld [vmem:[#allocation2] sm:$0xff]  ;;  %314 = vst.msk [vmem:[#allocation3 + $0x8] sm:$0xff] %vm24_vm0, %v312_v56 }
 0x1dd   :  { %313 = vst.msk [vmem:[#allocation3] sm:$0xff] %vm24_vm0, %v311_v57 }
 0x1de   :  { %494 = shalt.err (!%p491_p4)
}
 0x1df   :  { %s495_s13 = scalar_lea.hbm %s637_s4, 256 }
 0x1e0   :  { %p496_p5 = scmp.ne.s32.totalorder %s637_s4, %s495_s13  ;;  %p499_p6 = scmp.lt.u32.totalorder %s495_s13, %s637_s4 }
 0x1e2   :  { %p501_p7 = pnand %p499_p6, %p496_p5 }
 0x1e4   :  { %504 = shalt.err (!%p501_p7)
}
 0x1e5   :  { %s508_s18 = smov 128   ;;  %s509_s19 = smov 8  }
 0x1e6   :  { %326 = dma.vmem_to_hbm [thread:$0]  %s321_s10, 256, %s637_s4, [#allocation4], %s508_s18, %s508_s18, %s509_s19  }
 0x1e7   :  { %505 = dma.done.wait [#allocation4], 256  }
 0x1e8   :  { %506 = vsyncadd [#allocation4], 4294967040 }
 0x1e9   :  { %330 = vsyncpa [#allocation4], 1 }

</bundles_post_ra>
